<compile_context>
chip_gen: v7x
topology: tpu7x:2x2x1
jax: 0.10.0
libtpu: 0.0.40
codegen_flags: <defaults>
</compile_context>

<pallas_src>
import jax
import jax.numpy as jnp
from jax.experimental import pallas as pl
from jax.experimental.pallas import tpu as pltpu


def _round_up(x, m):
    return (x + m - 1) // m * m


def _mlp_kernel(x_ref, w1_ref, b1_ref, w2_ref, b2_ref, o_ref):
    # x_ref : (tm, D)   row tile of flattened images (f32 or bf16)
    # w1_ref: (D, H)    layer-1 weight, resident across all row tiles
    # b1_ref: (1, H)    f32
    # w2_ref: (H, Cp)   layer-2 weight, columns zero-padded to a multiple of 128
    # b2_ref: (1, Cp)   f32, zero-padded
    # o_ref : (tm, Cp)  lane-dense f32 output tile
    # Layer 1: MXU matmul with f32 accumulation; bias + ReLU stay f32 (VPU).
    h = jnp.dot(x_ref[...], w1_ref[...], preferred_element_type=jnp.float32)
    h = jnp.maximum(h + b1_ref[...], 0.0)
    # Layer 2: cast activation to the weight dtype (no-op in the f32 path).
    s = jnp.dot(h.astype(w2_ref.dtype), w2_ref[...],
                preferred_element_type=jnp.float32)
    o_ref[...] = (s + b2_ref[...]).astype(o_ref.dtype)


def two_layer_nn_forward(images, w1, b1, w2, b2, *, block_n=128,
                         use_bf16_matmul=False):
    """images: (N, C, H, W). w1: (D, hidden), b1: (hidden,),
    w2: (hidden, n_classes), b2: (n_classes,). Returns (N, n_classes) f32."""
    N = images.shape[0]
    D = images.shape[1] * images.shape[2] * images.shape[3]
    hidden = w1.shape[1]
    n_classes = w2.shape[1]

    x = images.reshape(N, D)  # same semantics as torch .view(N, -1)

    # --- lane-dense output: pad class dim to a multiple of 128 lanes ---
    c_pad = _round_up(n_classes, 128)
    w2p = jnp.zeros((hidden, c_pad), w2.dtype).at[:, :n_classes].set(w2)
    b2p = jnp.zeros((1, c_pad), jnp.float32).at[:, :n_classes].set(
        b2.reshape(1, n_classes).astype(jnp.float32))
    b1_2d = b1.reshape(1, hidden).astype(jnp.float32)

    # --- tile over the batch dim; pad rows to a sublane-aligned tile ---
    sublane = 16 if use_bf16_matmul else 8
    tm = min(block_n, _round_up(N, sublane))
    n_pad = _round_up(N, tm)
    if n_pad != N:
        x = jnp.zeros((n_pad, D), x.dtype).at[:N, :].set(x)

    if use_bf16_matmul:
        # Halve HBM->VMEM bytes for the dominant transfers and hit the bf16
        # MXU path on v6e/v7x; accumulation and elementwise math remain f32.
        x = x.astype(jnp.bfloat16)
        w1 = w1.astype(jnp.bfloat16)
        w2p = w2p.astype(jnp.bfloat16)

    out = pl.pallas_call(
        _mlp_kernel,
        out_shape=jax.ShapeDtypeStruct((n_pad, c_pad), jnp.float32),
        grid=(n_pad // tm,),
        in_specs=[
            pl.BlockSpec((tm, D), lambda i: (i, 0)),        # x: tiled over rows
            pl.BlockSpec((D, hidden), lambda i: (0, 0)),    # w1: resident
            pl.BlockSpec((1, hidden), lambda i: (0, 0)),    # b1: resident
            pl.BlockSpec((hidden, c_pad), lambda i: (0, 0)),  # w2 (padded): resident
            pl.BlockSpec((1, c_pad), lambda i: (0, 0)),     # b2 (padded): resident
        ],
        out_specs=pl.BlockSpec((tm, c_pad), lambda i: (i, 0)),
        compiler_params=pltpu.CompilerParams(
            # Row tiles are independent -> shard across v7x's 2 TensorCores;
            # no effect (and safe) on v5e/v6e.
            dimension_semantics=("parallel",),
        ),
    )(x, w1, b1_2d, w2p, b2p)

    return out[:N, :n_classes]


if __name__ == "__main__":
    # Shapes consistent with the module: im_size=(C, H, W)=(4, 16, 16),
    # hidden_dim=32, n_classes=10, batch N=2.
    N, C, H, W = 2, 4, 16, 16
    D = C * H * W
    hidden_dim = 32
    n_classes = 10

    key = jax.random.PRNGKey(0)
    k_x, k_w1, k_b1, k_w2, k_b2 = jax.random.split(key, 5)

    images = jax.random.normal(k_x, (N, C, H, W), dtype=jnp.float32)

    # Deterministic init matching torch.nn.Linear default: U(-1/sqrt(fan_in), ...).
    bound1 = 1.0 / jnp.sqrt(jnp.float32(D))
    w1 = jax.random.uniform(k_w1, (D, hidden_dim), jnp.float32, -bound1, bound1)
    b1 = jax.random.uniform(k_b1, (hidden_dim,), jnp.float32, -bound1, bound1)

    bound2 = 1.0 / jnp.sqrt(jnp.float32(hidden_dim))
    w2 = jax.random.uniform(k_w2, (hidden_dim, n_classes), jnp.float32,
                            -bound2, bound2)
    b2 = jax.random.uniform(k_b2, (n_classes,), jnp.float32, -bound2, bound2)

    # Reference: plain JAX, same math as the PyTorch module.
    x_flat = images.reshape(N, -1)
    ref = jnp.maximum(x_flat @ w1 + b1, 0.0) @ w2 + b2

    # 1) Exact-semantics f32 path (tiny batch -> single 8-row tile).
    scores = two_layer_nn_forward(images, w1, b1, w2, b2)
    jax.block_until_ready(scores)
    assert scores.shape == (N, n_classes)
    assert jnp.allclose(scores, ref, atol=1e-4, rtol=1e-4)

    # 2) Larger batch exercises the tiled path (grid > 1, weights resident).
    N_big = 256
    images_big = jax.random.normal(jax.random.PRNGKey(1), (N_big, C, H, W),
                                   dtype=jnp.float32)
    scores_big = two_layer_nn_forward(images_big, w1, b1, w2, b2, block_n=128)
    jax.block_until_ready(scores_big)
    ref_big = jnp.maximum(images_big.reshape(N_big, -1) @ w1 + b1, 0.0) @ w2 + b2
    assert scores_big.shape == (N_big, n_classes)
    assert jnp.allclose(scores_big, ref_big, atol=1e-4, rtol=1e-4)

    # 3) bf16 matmul-operand path (v6e/v7x DMA/MXU optimization); f32 accumulate,
    #    so only a modest tolerance relaxation vs the f32 reference is needed.
    scores_bf16 = two_layer_nn_forward(images, w1, b1, w2, b2,
                                       use_bf16_matmul=True)
    jax.block_until_ready(scores_bf16)
    assert scores_bf16.shape == (N, n_classes)
    assert jnp.allclose(scores_bf16, ref, atol=5e-2, rtol=5e-2)

    print("KERNEL_OK")
</pallas_src>

<mosaic_0001>
module attributes {stable_mosaic.version = 11 : i64} {
  func.func @_mlp_kernel(%arg0: i32, %arg1: memref<8x1024xf32, #tpu.memory_space<vmem>>, %arg2: memref<1024x32xf32, #tpu.memory_space<vmem>>, %arg3: memref<1x32xf32, #tpu.memory_space<vmem>>, %arg4: memref<32x128xf32, #tpu.memory_space<vmem>>, %arg5: memref<1x128xf32, #tpu.memory_space<vmem>>, %arg6: memref<8x128xf32, #tpu.memory_space<vmem>>) attributes {dimension_semantics = [#tpu.dimension_semantics<parallel>], iteration_bounds = array<i64: 1>, scalar_prefetch = 0 : i64, scratch_operands = 0 : i64, tpu.core_type = #tpu.core_type<tc>, window_params = [{transform_indices = @transform_0, window_bounds = array<i64: 8, 1024>}, {pipeline_mode = #tpu.pipeline_mode<synchronous>, transform_indices = @transform_1, window_bounds = array<i64: 1024, 32>}, {pipeline_mode = #tpu.pipeline_mode<synchronous>, transform_indices = @transform_2, window_bounds = array<i64: 1, 32>}, {pipeline_mode = #tpu.pipeline_mode<synchronous>, transform_indices = @transform_3, window_bounds = array<i64: 32, 128>}, {pipeline_mode = #tpu.pipeline_mode<synchronous>, transform_indices = @transform_4, window_bounds = array<i64: 1, 128>}, {transform_indices = @transform_5, window_bounds = array<i64: 8, 128>}]} {
    %c0 = arith.constant 0 : index
    %c0_0 = arith.constant 0 : index
    %0 = vector.load %arg1[%c0, %c0_0] : memref<8x1024xf32, #tpu.memory_space<vmem>>, vector<8x1024xf32>
    %c0_1 = arith.constant 0 : index
    %c0_2 = arith.constant 0 : index
    %1 = vector.load %arg2[%c0_1, %c0_2] : memref<1024x32xf32, #tpu.memory_space<vmem>>, vector<1024x32xf32>
    %cst = arith.constant dense<0.000000e+00> : vector<8x32xf32>
    %2 = tpu.matmul %0, %1, %cst {dimension_numbers = #tpu.dot_dimension_numbers<[1], [0], [0], [1], [0, 0, 1, 1], [], []>} : vector<8x1024xf32>, vector<1024x32xf32>, vector<8x32xf32> -> vector<8x32xf32>
    %c0_3 = arith.constant 0 : index
    %c0_4 = arith.constant 0 : index
    %3 = vector.load %arg3[%c0_3, %c0_4] : memref<1x32xf32, #tpu.memory_space<vmem>>, vector<1x32xf32>
    %4 = vector.broadcast %3 : vector<1x32xf32> to vector<8x32xf32>
    %5 = arith.addf %2, %4 : vector<8x32xf32>
    %cst_5 = arith.constant 0.000000e+00 : f32
    %6 = vector.broadcast %cst_5 : f32 to vector<8x32xf32>
    %7 = arith.maximumf %5, %6 : vector<8x32xf32>
    %c0_6 = arith.constant 0 : index
    %c0_7 = arith.constant 0 : index
    %8 = vector.load %arg4[%c0_6, %c0_7] : memref<32x128xf32, #tpu.memory_space<vmem>>, vector<32x128xf32>
    %cst_8 = arith.constant dense<0.000000e+00> : vector<8x128xf32>
    %9 = tpu.matmul %7, %8, %cst_8 {dimension_numbers = #tpu.dot_dimension_numbers<[1], [0], [0], [1], [0, 0, 1, 1], [], []>} : vector<8x32xf32>, vector<32x128xf32>, vector<8x128xf32> -> vector<8x128xf32>
    %c0_9 = arith.constant 0 : index
    %c0_10 = arith.constant 0 : index
    %10 = vector.load %arg5[%c0_9, %c0_10] : memref<1x128xf32, #tpu.memory_space<vmem>>, vector<1x128xf32>
    %11 = vector.broadcast %10 : vector<1x128xf32> to vector<8x128xf32>
    %12 = arith.addf %9, %11 : vector<8x128xf32>
    %c0_11 = arith.constant 0 : index
    %c0_12 = arith.constant 0 : index
    %13 = vector.load %arg6[%c0_11, %c0_12] : memref<8x128xf32, #tpu.memory_space<vmem>>, vector<8x128xf32>
    tpu.vector_store %arg6[%c0_11, %c0_12], %12 {strides = array<i32>} : memref<8x128xf32, #tpu.memory_space<vmem>>, vector<8x128xf32>,
    return
  }
  func.func @transform_0(%arg0: i32) -> (i32, i32) {
    %c0_i32 = arith.constant 0 : i32
    %c0_i32_0 = arith.constant 0 : i32
    return %arg0, %c0_i32 : i32, i32
  }
  func.func @transform_1(%arg0: i32) -> (i32, i32) {
    %c0_i32 = arith.constant 0 : i32
    %c0_i32_0 = arith.constant 0 : i32
    %c0_i32_1 = arith.constant 0 : i32
    return %c0_i32, %c0_i32_0 : i32, i32
  }
  func.func @transform_2(%arg0: i32) -> (i32, i32) {
    %c0_i32 = arith.constant 0 : i32
    %c0_i32_0 = arith.constant 0 : i32
    %c0_i32_1 = arith.constant 0 : i32
    return %c0_i32, %c0_i32_0 : i32, i32
  }
  func.func @transform_3(%arg0: i32) -> (i32, i32) {
    %c0_i32 = arith.constant 0 : i32
    %c0_i32_0 = arith.constant 0 : i32
    %c0_i32_1 = arith.constant 0 : i32
    return %c0_i32, %c0_i32_0 : i32, i32
  }
  func.func @transform_4(%arg0: i32) -> (i32, i32) {
    %c0_i32 = arith.constant 0 : i32
    %c0_i32_0 = arith.constant 0 : i32
    %c0_i32_1 = arith.constant 0 : i32
    return %c0_i32, %c0_i32_0 : i32, i32
  }
  func.func @transform_5(%arg0: i32) -> (i32, i32) {
    %c0_i32 = arith.constant 0 : i32
    %c0_i32_0 = arith.constant 0 : i32
    return %arg0, %c0_i32 : i32, i32
  }
}

</mosaic_0001>

<bundles_post_ra>
// kernel: tpu_custom_call.1
= control target key start
LH: loop header
LB: loop body
LE: loop exit
PB: predicated region body
PF: predicated region fallthrough
CT: control target
= control target key end

     0   :  { %s1338_s0 = inlined_call_operand.vmem [shape: f32[8,1024], index: 0, kind: input, shape index: {}]   ;;  %s1339_s1 = inlined_call_operand.vmem [shape: f32[1024,32], index: 1, kind: input, shape index: {}]   ;;  %s1340_s2 = inlined_call_operand.vmem [shape: f32[1,32], index: 2, kind: input, shape index: {}]   ;;  %s1341_s3 = inlined_call_operand.vmem [shape: f32[32,128], index: 3, kind: input, shape index: {}]   ;;  %s1342_s4 = inlined_call_operand.vmem [shape: f32[1,128], index: 4, kind: input, shape index: {}]   ;;  %s1343_s5 = inlined_call_operand.hbm [shape: f32[8,128], index: 5, kind: output, shape index: {}]  }
   0x1   :  { %v45_v0 = vld [vmem:[%s1339_s1 + $0x80] sm:$0xff]  ;;  %v46_v1 = vld [vmem:[%s1339_s1 + $0x88] sm:$0xff]  ;;  %v47_v11 = vld [vmem:[%s1339_s1 + $0x90] sm:$0xff] }
   0x2   :  { %v29_v2 = vld [vmem:[%s1339_s1] sm:$0xff]  ;;  %v704_v3 = vpack.c.bf16 %v46_v1, %v45_v0  ;;  %v30_v4 = vld [vmem:[%s1339_s1 + $0x8] sm:$0xff]  ;;  %v48_v13 = vld [vmem:[%s1339_s1 + $0x98] sm:$0xff] }
   0x3   :  { %v77_v5 = vld [vmem:[%s1339_s1 + $0x180] sm:$0xff]  ;;  %v78_v6 = vld [vmem:[%s1339_s1 + $0x188] sm:$0xff]  ;;  %v706_v7 = vpack.c.bf16 %v30_v4, %v29_v2  ;;  %v31_v14 = vld [vmem:[%s1339_s1 + $0x10] sm:$0xff]  ;;  %v708_v16 = vpack.c.bf16 %v48_v13, %v47_v11 }
   0x4   :  { %v736_v8 = vpack.c.bf16 %v78_v6, %v77_v5  ;;  %v61_v9 = vld [vmem:[%s1339_s1 + $0x100] sm:$0xff]  ;;  %v62_v10 = vld [vmem:[%s1339_s1 + $0x108] sm:$0xff]  ;;  %705 = vmatprep.subr.bf16.mxu0 %v704_v3  ;;  %v32_v15 = vld [vmem:[%s1339_s1 + $0x18] sm:$0xff] }
   0x5   :  { %v738_v12 = vpack.c.bf16 %v62_v10, %v61_v9  ;;  %707 = vmatpush3.bf16.msra.mxu0 %v706_v7  ;;  %v710_v17 = vpack.c.bf16 %v32_v15, %v31_v14  ;;  %v79_v18 = vld [vmem:[%s1339_s1 + $0x190] sm:$0xff]  ;;  %v80_v19 = vld [vmem:[%s1339_s1 + $0x198] sm:$0xff]  ;;  %v49_v23 = vld [vmem:[%s1339_s1 + $0xa0] sm:$0xff] }
   0x6   :  { %737 = vmatprep.subr.bf16.mxu1 %v736_v8  ;;  %v63_v20 = vld [vmem:[%s1339_s1 + $0x110] sm:$0xff]  ;;  %v740_v21 = vpack.c.bf16 %v80_v19, %v79_v18  ;;  %v64_v22 = vld [vmem:[%s1339_s1 + $0x118] sm:$0xff]  ;;  %v50_v24 = vld [vmem:[%s1339_s1 + $0xa8] sm:$0xff]  ;;  %709 = vmatprep.subr.bf16.mxu0 %v708_v16 }
   0x7   :  { %739 = vmatpush3.bf16.msra.mxu1 %v738_v12  ;;  %v742_v25 = vpack.c.bf16 %v64_v22, %v63_v20  ;;  %v712_v26 = vpack.c.bf16 %v50_v24, %v49_v23  ;;  %v33_v27 = vld [vmem:[%s1339_s1 + $0x20] sm:$0xff]  ;;  %v34_v28 = vld [vmem:[%s1339_s1 + $0x28] sm:$0xff]  ;;  %v51_v35 = vld [vmem:[%s1339_s1 + $0xb0] sm:$0xff] }
   0x8   :  { %v81_v29 = vld [vmem:[%s1339_s1 + $0x1a0] sm:$0xff]  ;;  %741 = vmatprep.subr.bf16.mxu1 %v740_v21  ;;  %v82_v30 = vld [vmem:[%s1339_s1 + $0x1a8] sm:$0xff]  ;;  %v714_v33 = vpack.c.bf16 %v34_v28, %v33_v27  ;;  %v52_v36 = vld [vmem:[%s1339_s1 + $0xb8] sm:$0xff] }
   0x9   :  { %v65_v31 = vld [vmem:[%s1339_s1 + $0x120] sm:$0xff]  ;;  %v66_v32 = vld [vmem:[%s1339_s1 + $0x128] sm:$0xff]  ;;  %711 = vmatpush3.bf16.msra.mxu0 %v710_v17  ;;  %v744_v34 = vpack.c.bf16 %v82_v30, %v81_v29  ;;  %v35_v37 = vld [vmem:[%s1339_s1 + $0x30] sm:$0xff]  ;;  %v716_v39 = vpack.c.bf16 %v52_v36, %v51_v35 }
   0xa   :  { %713 = vmatprep.subr.bf16.mxu0 %v712_v26  ;;  %v746_v38 = vpack.c.bf16 %v66_v32, %v65_v31  ;;  %v36_v40 = vld [vmem:[%s1339_s1 + $0x38] sm:$0xff]  ;;  %v83_v41 = vld [vmem:[%s1339_s1 + $0x1b0] sm:$0xff]  ;;  %v53_v46 = vld [vmem:[%s1339_s1 + $0xc0] sm:$0xff] }
   0xb   :  { %743 = vmatpush3.bf16.msra.mxu1 %v742_v25  ;;  %v84_v42 = vld [vmem:[%s1339_s1 + $0x1b8] sm:$0xff]  ;;  %v67_v44 = vld [vmem:[%s1339_s1 + $0x130] sm:$0xff]  ;;  %v54_v47 = vld [vmem:[%s1339_s1 + $0xc8] sm:$0xff]  ;;  %v718_v48 = vpack.c.bf16 %v36_v40, %v35_v37 }
   0xc   :  { %745 = vmatprep.subr.bf16.mxu1 %v744_v34  ;;  %v748_v43 = vpack.c.bf16 %v84_v42, %v83_v41  ;;  %v68_v45 = vld [vmem:[%s1339_s1 + $0x138] sm:$0xff]  ;;  %v85_v49 = vld [vmem:[%s1339_s1 + $0x1c0] sm:$0xff]  ;;  %v86_v50 = vld [vmem:[%s1339_s1 + $0x1c8] sm:$0xff]  ;;  %v720_v52 = vpack.c.bf16 %v54_v47, %v53_v46 }
   0xd   :  { %715 = vmatpush3.bf16.msra.mxu0 %v714_v33  ;;  %v750_v51 = vpack.c.bf16 %v68_v45, %v67_v44  ;;  %v37_v53 = vld [vmem:[%s1339_s1 + $0x40] sm:$0xff]  ;;  %v38_v54 = vld [vmem:[%s1339_s1 + $0x48] sm:$0xff]  ;;  %v752_v56 = vpack.c.bf16 %v86_v50, %v85_v49  ;;  %v55_v58 = vld [vmem:[%s1339_s1 + $0xd0] sm:$0xff] }
   0xe   :  { %717 = vmatprep.subr.bf16.mxu0 %v716_v39  ;;  %v69_v55 = vld [vmem:[%s1339_s1 + $0x140] sm:$0xff]  ;;  %v70_v57 = vld [vmem:[%s1339_s1 + $0x148] sm:$0xff]  ;;  %v56_v59 = vld [vmem:[%s1339_s1 + $0xd8] sm:$0xff]  ;;  %v722_v62 = vpack.c.bf16 %v38_v54, %v37_v53 }
   0xf   :  { %747 = vmatpush3.bf16.msra.mxu1 %v746_v38  ;;  %v87_v60 = vld [vmem:[%s1339_s1 + $0x1d0] sm:$0xff]  ;;  %v88_v61 = vld [vmem:[%s1339_s1 + $0x1d8] sm:$0xff]  ;;  %v754_v63 = vpack.c.bf16 %v70_v57, %v69_v55  ;;  %v724_v0 = vpack.c.bf16 %v56_v59, %v55_v58  ;;  %v57_v6 = vld [vmem:[%s1339_s1 + $0xe0] sm:$0xff] }
  0x10   :  { %749 = vmatprep.subr.bf16.mxu1 %v748_v43  ;;  %v39_v1 = vld [vmem:[%s1339_s1 + $0x50] sm:$0xff]  ;;  %v40_v2 = vld [vmem:[%s1339_s1 + $0x58] sm:$0xff]  ;;  %v756_v4 = vpack.c.bf16 %v88_v61, %v87_v60  ;;  %v58_v7 = vld [vmem:[%s1339_s1 + $0xe8] sm:$0xff] }
  0x11   :  { %719 = vmatpush3.bf16.msra.mxu0 %v718_v48  ;;  %v71_v3 = vld [vmem:[%s1339_s1 + $0x150] sm:$0xff]  ;;  %v72_v5 = vld [vmem:[%s1339_s1 + $0x158] sm:$0xff]  ;;  %v89_v8 = vld [vmem:[%s1339_s1 + $0x1e0] sm:$0xff]  ;;  %v726_v10 = vpack.c.bf16 %v40_v2, %v39_v1  ;;  %v728_v14 = vpack.c.bf16 %v58_v7, %v57_v6 }
  0x12   :  { %721 = vmatprep.subr.bf16.mxu0 %v720_v52  ;;  %v90_v9 = vld [vmem:[%s1339_s1 + $0x1e8] sm:$0xff]  ;;  %v41_v11 = vld [vmem:[%s1339_s1 + $0x60] sm:$0xff]  ;;  %v758_v13 = vpack.c.bf16 %v72_v5, %v71_v3  ;;  %v59_v19 = vld [vmem:[%s1339_s1 + $0xf0] sm:$0xff] }
  0x13   :  { %751 = vmatpush3.bf16.msra.mxu1 %v750_v51  ;;  %v42_v12 = vld [vmem:[%s1339_s1 + $0x68] sm:$0xff]  ;;  %v73_v15 = vld [vmem:[%s1339_s1 + $0x160] sm:$0xff]  ;;  %v760_v18 = vpack.c.bf16 %v90_v9, %v89_v8  ;;  %v60_v20 = vld [vmem:[%s1339_s1 + $0xf8] sm:$0xff] }
  0x14   :  { %753 = vmatprep.subr.bf16.mxu1 %v752_v56  ;;  %v74_v16 = vld [vmem:[%s1339_s1 + $0x168] sm:$0xff]  ;;  %v24_v21 = vld [vmem:[%s1338_s0 + $0x18] sm:$0xff]  ;;  %v91_v22 = vld [vmem:[%s1339_s1 + $0x1f0] sm:$0xff]  ;;  %v730_v24 = vpack.c.bf16 %v42_v12, %v41_v11  ;;  %v732_v26 = vpack.c.bf16 %v60_v20, %v59_v19 }
  0x15   :  { %723 = vmatpush3.bf16.msra.mxu0 %v722_v62  ;;  %v22_v17 = vld [vmem:[%s1338_s0 + $0x8] sm:$0xff]  ;;  %v92_v23 = vld [vmem:[%s1339_s1 + $0x1f8] sm:$0xff]  ;;  %298 = vmatprep.mubr.f32.mxu1 %v24_v21  ;;  %v762_v25 = vpack.c.bf16 %v74_v16, %v73_v15  ;;  %v43_v27 = vld [vmem:[%s1339_s1 + $0x70] sm:$0xff] }
  0x16   :  { %725 = vmatprep.subr.bf16.mxu0 %v724_v0  ;;  %228 = vmatprep.mubr.f32.mxu0 %v22_v17  ;;  %v44_v28 = vld [vmem:[%s1339_s1 + $0x78] sm:$0xff]  ;;  %v75_v29 = vld [vmem:[%s1339_s1 + $0x170] sm:$0xff]  ;;  %v764_v30 = vpack.c.bf16 %v92_v23, %v91_v22  ;;  %v109_v32 = vld [vmem:[%s1339_s1 + $0x280] sm:$0xff] }
  0x17   :  { %755 = vmatpush3.bf16.msra.mxu1 %v754_v63  ;;  %v76_v31 = vld [vmem:[%s1339_s1 + $0x178] sm:$0xff]  ;;  %v110_v33 = vld [vmem:[%s1339_s1 + $0x288] sm:$0xff]  ;;  %v141_v34 = vld [vmem:[%s1339_s1 + $0x380] sm:$0xff]  ;;  %v734_v36 = vpack.c.bf16 %v44_v28, %v43_v27 }
  0x18   :  { %757 = vmatprep.subr.bf16.mxu1 %v756_v4  ;;  %v142_v35 = vld [vmem:[%s1339_s1 + $0x388] sm:$0xff]  ;;  %v766_v37 = vpack.c.bf16 %v76_v31, %v75_v29  ;;  %v768_v38 = vpack.c.bf16 %v110_v33, %v109_v32  ;;  %v93_v39 = vld [vmem:[%s1339_s1 + $0x200] sm:$0xff]  ;;  %v111_v44 = vld [vmem:[%s1339_s1 + $0x290] sm:$0xff] }
  0x19   :  { %727 = vmatpush3.bf16.msra.mxu0 %v726_v10  ;;  %v94_v40 = vld [vmem:[%s1339_s1 + $0x208] sm:$0xff]  ;;  %v125_v41 = vld [vmem:[%s1339_s1 + $0x300] sm:$0xff]  ;;  %v800_v42 = vpack.c.bf16 %v142_v35, %v141_v34  ;;  %v112_v45 = vld [vmem:[%s1339_s1 + $0x298] sm:$0xff] }
  0x1a   :  { %729 = vmatprep.subr.bf16.mxu0 %v728_v14  ;;  %v126_v43 = vld [vmem:[%s1339_s1 + $0x308] sm:$0xff]  ;;  %v143_v46 = vld [vmem:[%s1339_s1 + $0x390] sm:$0xff]  ;;  %v144_v47 = vld [vmem:[%s1339_s1 + $0x398] sm:$0xff]  ;;  %v770_v49 = vpack.c.bf16 %v94_v40, %v93_v39  ;;  %v772_v52 = vpack.c.bf16 %v112_v45, %v111_v44 }
  0x1b   :  { %759 = vmatpush3.bf16.msra.mxu1 %v758_v13  ;;  %v21_v48 = vld [vmem:[%s1338_s0] sm:$0xff]  ;;  %v23_v50 = vld [vmem:[%s1338_s0 + $0x10] sm:$0xff]  ;;  %v802_v51 = vpack.c.bf16 %v126_v43, %v125_v41  ;;  %v96_v54 = vld [vmem:[%s1339_s1 + $0x218] sm:$0xff]  ;;  %v804_v56 = vpack.c.bf16 %v144_v47, %v143_v46 }
  0x1c   :  { %761 = vmatprep.subr.bf16.mxu1 %v760_v18  ;;  %v95_v53 = vld [vmem:[%s1339_s1 + $0x210] sm:$0xff]  ;;  %v128_v57 = vld [vmem:[%s1339_s1 + $0x318] sm:$0xff]  ;;  %v113_v58 = vld [vmem:[%s1339_s1 + $0x2a0] sm:$0xff] }
  0x1d   :  { %731 = vmatpush3.bf16.msra.mxu0 %v730_v24  ;;  %v127_v55 = vld [vmem:[%s1339_s1 + $0x310] sm:$0xff]  ;;  %v114_v59 = vld [vmem:[%s1339_s1 + $0x2a8] sm:$0xff]  ;;  %v145_v60 = vld [vmem:[%s1339_s1 + $0x3a0] sm:$0xff]  ;;  %v774_v62 = vpack.c.bf16 %v96_v54, %v95_v53 }
  0x1e   :  { %733 = vmatprep.subr.bf16.mxu0 %v732_v26  ;;  %v146_v61 = vld [vmem:[%s1339_s1 + $0x3a8] sm:$0xff]  ;;  %v806_v63 = vpack.c.bf16 %v128_v57, %v127_v55  ;;  %v776_v0 = vpack.c.bf16 %v114_v59, %v113_v58  ;;  %v97_v1 = vld [vmem:[%s1339_s1 + $0x220] sm:$0xff]  ;;  %v115_v6 = vld [vmem:[%s1339_s1 + $0x2b0] sm:$0xff] }
  0x1f   :  { %763 = vmatpush3.bf16.msra.mxu1 %v762_v25  ;;  %v98_v2 = vld [vmem:[%s1339_s1 + $0x228] sm:$0xff]  ;;  %v129_v3 = vld [vmem:[%s1339_s1 + $0x320] sm:$0xff]  ;;  %v808_v4 = vpack.c.bf16 %v146_v61, %v145_v60  ;;  %v116_v7 = vld [vmem:[%s1339_s1 + $0x2b8] sm:$0xff] }
  0x20   :  { %765 = vmatprep.subr.bf16.mxu1 %v764_v30  ;;  %v130_v5 = vld [vmem:[%s1339_s1 + $0x328] sm:$0xff]  ;;  %v147_v8 = vld [vmem:[%s1339_s1 + $0x3b0] sm:$0xff]  ;;  %v148_v9 = vld [vmem:[%s1339_s1 + $0x3b8] sm:$0xff]  ;;  %v778_v10 = vpack.c.bf16 %v98_v2, %v97_v1  ;;  %v780_v12 = vpack.c.bf16 %v116_v7, %v115_v6 }
  0x21   :  { %735 = vmatpush3.bf16.msra.mxu0 %v734_v36  ;;  %v810_v11 = vpack.c.bf16 %v130_v5, %v129_v3  ;;  %v99_v13 = vld [vmem:[%s1339_s1 + $0x230] sm:$0xff]  ;;  %v100_v14 = vld [vmem:[%s1339_s1 + $0x238] sm:$0xff]  ;;  %v812_v16 = vpack.c.bf16 %v148_v9, %v147_v8  ;;  %v117_v18 = vld [vmem:[%s1339_s1 + $0x2c0] sm:$0xff] }
  0x22   :  { %769 = vmatprep.subr.bf16.mxu0 %v768_v38  ;;  %v131_v15 = vld [vmem:[%s1339_s1 + $0x330] sm:$0xff]  ;;  %v132_v17 = vld [vmem:[%s1339_s1 + $0x338] sm:$0xff]  ;;  %v118_v19 = vld [vmem:[%s1339_s1 + $0x2c8] sm:$0xff]  ;;  %v782_v22 = vpack.c.bf16 %v100_v14, %v99_v13 }
  0x23   :  { %767 = vmatpush3.bf16.msra.mxu1 %v766_v37  ;;  %v149_v20 = vld [vmem:[%s1339_s1 + $0x3c0] sm:$0xff]  ;;  %v150_v21 = vld [vmem:[%s1339_s1 + $0x3c8] sm:$0xff]  ;;  %v28_v25 = vld [vmem:[%s1338_s0 + $0x38] sm:$0xff]  ;;  %v814_v26 = vpack.c.bf16 %v132_v17, %v131_v15  ;;  %v784_v27 = vpack.c.bf16 %v118_v19, %v117_v18 }
  0x24   :  { %801 = vmatprep.subr.bf16.mxu1 %v800_v42  ;;  %229 = vmatmul.mubr.f32.vlgmr.msra.gmra.mrb[0].mxu0 %v21_v48  ;;  %v101_v23 = vld [vmem:[%s1339_s1 + $0x240] sm:$0xff]  ;;  %v26_v24 = vld [vmem:[%s1338_s0 + $0x28] sm:$0xff] }
  0x25   :  { %771 = vmatpush3.bf16.msra.mxu0 %v770_v49  ;;  %v102_v28 = vld [vmem:[%s1339_s1 + $0x248] sm:$0xff]  ;;  %v133_v29 = vld [vmem:[%s1339_s1 + $0x340] sm:$0xff] }
  0x26   :  { %299 = vmatmul.mubr.f32.vlgmr.msra.gmra.mrb[0].mxu1 %v23_v50  ;;  %773 = vmatprep.subr.bf16.mxu0 %v772_v52 }
  0x27   :  { %803 = vmatpush3.bf16.msra.mxu1 %v802_v51 }
  0x28   :  { %805 = vmatprep.subr.bf16.mxu1 %v804_v56 }
  0x29   :  { %775 = vmatpush3.bf16.msra.mxu0 %v774_v62 }
  0x2a   :  { %777 = vmatprep.subr.bf16.mxu0 %v776_v0 }
  0x2b   :  { %807 = vmatpush3.bf16.msra.mxu1 %v806_v63 }
  0x2c   :  { %809 = vmatprep.subr.bf16.mxu1 %v808_v4 }
  0x2d   :  { %779 = vmatpush3.bf16.msra.mxu0 %v778_v10 }
  0x2e   :  { %781 = vmatprep.subr.bf16.mxu0 %v780_v12 }
  0x2f   :  { %811 = vmatpush3.bf16.msra.mxu1 %v810_v11 }
  0x30   :  { %10 = vsyncpa [#allocation3], 0  ;;  %813 = vmatprep.subr.bf16.mxu1 %v812_v16  ;;  %v816_v30 = vpack.c.bf16 %v150_v21, %v149_v20  ;;  %v134_v31 = vld [vmem:[%s1339_s1 + $0x348] sm:$0xff]  ;;  %v119_v32 = vld [vmem:[%s1339_s1 + $0x2d0] sm:$0xff]  ;;  %368 = vmatprep.mubr.f32.mxu0 %v26_v24  ;;  %v786_v36 = vpack.c.bf16 %v102_v28, %v101_v23  ;;  %v866_v11 = vmov 0.0|0.0   ;;  %vm867_vm0 = vmmov 0  }
  0x31   :  { %v120_v33 = vld [vmem:[%s1339_s1 + $0x2d8] sm:$0xff]  ;;  %v151_v34 = vld [vmem:[%s1339_s1 + $0x3d0] sm:$0xff]  ;;  %438 = vmatprep.mubr.f32.mxu1 %v28_v25  ;;  %783 = vmatpush3.bf16.msra.mxu0 %v782_v22  ;;  %v818_v37 = vpack.c.bf16 %v134_v31, %v133_v29  ;;  %v121_v44 = vld [vmem:[%s1339_s1 + $0x2e0] sm:$0xff]  ;;  %v868_v15 = vmov 0.0   ;;  %vm456_vm1 = vcmask 261120   ;;  %s869_s23 = smov [#allocation2]  }
  0x32   :  { %v152_v35 = vld [vmem:[%s1339_s1 + $0x3d8] sm:$0xff]  ;;  %785 = vmatprep.subr.bf16.mxu0 %v784_v27  ;;  %v788_v38 = vpack.c.bf16 %v120_v33, %v119_v32  ;;  %v103_v39 = vld [vmem:[%s1339_s1 + $0x250] sm:$0xff]  ;;  %v122_v45 = vld [vmem:[%s1339_s1 + $0x2e8] sm:$0xff]  ;;  %s537_s24 = sshll.u32 %s869_s23, 4  ;;  %s538_s24 = int_to_ptr.vmem [resolvable:$true] %s537_s24 }
  0x33   :  { %815 = vmatpush3.bf16.msra.mxu1 %v814_v26  ;;  %v104_v40 = vld [vmem:[%s1339_s1 + $0x258] sm:$0xff]  ;;  %v135_v41 = vld [vmem:[%s1339_s1 + $0x350] sm:$0xff]  ;;  %v820_v42 = vpack.c.bf16 %v152_v35, %v151_v34  ;;  %v153_v46 = vld [vmem:[%s1339_s1 + $0x3e0] sm:$0xff]  ;;  %v792_v50 = vpack.c.bf16 %v122_v45, %v121_v44  ;;  %s842_s25 = scalar_lea.vmem %s538_s24, 128  ;;  %p847_p1 = scmp.lt.s32.totalorder %s538_s24, %s538_s24 }
  0x34   :  { %817 = vmatprep.subr.bf16.mxu1 %v816_v30  ;;  %v136_v43 = vld [vmem:[%s1339_s1 + $0x358] sm:$0xff]  ;;  %v154_v47 = vld [vmem:[%s1339_s1 + $0x3e8] sm:$0xff]  ;;  %v790_v48 = vpack.c.bf16 %v104_v40, %v103_v39  ;;  %v105_v51 = vld [vmem:[%s1339_s1 + $0x260] sm:$0xff]  ;;  %p843_p0 = scmp.ne.s32.totalorder %s538_s24, %s842_s25  ;;  %p848_p2 = scmp.lt.s32.totalorder %s842_s25, %s842_s25 }
  0x35   :  { %787 = vmatpush3.bf16.msra.mxu0 %v786_v36  ;;  %v822_v49 = vpack.c.bf16 %v136_v43, %v135_v41  ;;  %v106_v52 = vld [vmem:[%s1339_s1 + $0x268] sm:$0xff]  ;;  %v137_v53 = vld [vmem:[%s1339_s1 + $0x360] sm:$0xff]  ;;  %v824_v54 = vpack.c.bf16 %v154_v47, %v153_v46  ;;  %v123_v56 = vld [vmem:[%s1339_s1 + $0x2f0] sm:$0xff] }
  0x36   :  { %789 = vmatprep.subr.bf16.mxu0 %v788_v38  ;;  %v138_v55 = vld [vmem:[%s1339_s1 + $0x368] sm:$0xff]  ;;  %v124_v57 = vld [vmem:[%s1339_s1 + $0x2f8] sm:$0xff]  ;;  %v155_v58 = vld [vmem:[%s1339_s1 + $0x3f0] sm:$0xff]  ;;  %v794_v60 = vpack.c.bf16 %v106_v52, %v105_v51  ;;  %p849_p3 = por %p848_p2, %p847_p1 }
  0x37   :  { %819 = vmatpush3.bf16.msra.mxu1 %v818_v37  ;;  %v156_v59 = vld [vmem:[%s1339_s1 + $0x3f8] sm:$0xff]  ;;  %v826_v61 = vpack.c.bf16 %v138_v55, %v137_v53  ;;  %v796_v62 = vpack.c.bf16 %v124_v57, %v123_v56  ;;  %v107_v63 = vld [vmem:[%s1339_s1 + $0x270] sm:$0xff]  ;;  %v25_v6 = vld [vmem:[%s1338_s0 + $0x20] sm:$0xff] }
  0x38   :  { %821 = vmatprep.subr.bf16.mxu1 %v820_v42  ;;  %v108_v0 = vld [vmem:[%s1339_s1 + $0x278] sm:$0xff]  ;;  %v828_v1 = vpack.c.bf16 %v156_v59, %v155_v58  ;;  %v139_v2 = vld [vmem:[%s1339_s1 + $0x370] sm:$0xff]  ;;  %v445_v8 = vld [vmem:[%s1341_s3] sm:$0xff]  ;;  %p850_p4 = pnand %p849_p3, %p843_p0 }
  0x39   :  { %791 = vmatpush3.bf16.msra.mxu0 %v790_v48  ;;  %v140_v3 = vld [vmem:[%s1339_s1 + $0x378] sm:$0xff]  ;;  %v798_v4 = vpack.c.bf16 %v108_v0, %v107_v63  ;;  %v27_v7 = vld [vmem:[%s1338_s0 + $0x30] sm:$0xff]  ;;  %v446_v9 = vld [vmem:[%s1341_s3 + $0x8] sm:$0xff] }
  0x3a   :  { %793 = vmatprep.subr.bf16.mxu0 %v792_v50  ;;  %v830_v5 = vpack.c.bf16 %v140_v3, %v139_v2  ;;  %v833_v10 = vpack.c.bf16 %v446_v9, %v445_v8  ;;  %v447_v12 = vld [vmem:[%s1341_s3 + $0x10] sm:$0xff]  ;;  %v448_v13 = vld [vmem:[%s1341_s3 + $0x18] sm:$0xff]  ;;  %v545_v17 = vld [vmem:[%s1340_s2] ss:$0 sm:$0xff] }
  0x3b   :  { %823 = vmatpush3.bf16.msra.mxu1 %v822_v49  ;;  %v836_v14 = vpack.c.bf16 %v448_v13, %v447_v12  ;;  %v546_v34 = vld [vmem:[%s1342_s4] ss:$0 sm:$0xff] }
  0x3c   :  { %825 = vmatprep.subr.bf16.mxu1 %v824_v54 }
  0x3d   :  { %795 = vmatpush3.bf16.msra.mxu0 %v794_v60 }
  0x3e   :  { %797 = vmatprep.subr.bf16.mxu0 %v796_v62 }
  0x3f   :  { %827 = vmatpush3.bf16.msra.mxu1 %v826_v61 }
  0x40   :  { %829 = vmatprep.subr.bf16.mxu1 %v828_v1 }
  0x41   :  { %799 = vmatpush3.bf16.msra.mxu0 %v798_v4 }
  0x42   :  { %832 = vmatprep.subr.bf16.mxu0 %v866_v11 }
  0x43   :  { %831 = vmatpush3.bf16.msra.mxu1 %v830_v5 }
  0x44   :  { %369 = vmatmul.mubr.f32.vlgmr.msra.gmra.mrb[2].mxu0 %v25_v6 }
  0x45   :  { %834 = vmatpush3.bf16.msra.mxu0 %v833_v10  ;;  %701 = vmatprep.mubr.msk.f32.mxu0 %vm867_vm0, %v868_v15 }
  0x46   :  { %439 = vmatmul.mubr.f32.vlgmr.msra.gmra.mrb[2].mxu1 %v27_v7  ;;  %835 = vmatprep.subr.bf16.mxu0 %v866_v11 }
  0x49   :  { %837 = vmatpush3.bf16.msra.mxu0 %v836_v14 }
  0xf7   :  { %v580_v16 = vpop.f32.mrb[0].mxu0 }
  0xf8   :  { %v581_v18 = vpop.f32.mrb[1].mxu0 }
  0xf9   :  { %v615_v19 = vpop.f32.mrb[0].mxu1  ;;  %v582_v20 = vadd.f32 %v581_v18, %v580_v16 }
  0xfa   :  { %v616_v21 = vpop.f32.mrb[1].mxu1 }
  0xfb   :  { %v617_v22 = vadd.f32 %v616_v21, %v615_v19  ;;  %v231_v23 = vadd.f32 %v582_v20, %v545_v17 }
  0xfd   :  { %v301_v24 = vadd.f32 %v617_v22, %v231_v23 }
 0x117   :  { %v650_v25 = vpop.f32.mrb[2].mxu0 }
 0x118   :  { %v651_v26 = vpop.f32.mrb[3].mxu0 }
 0x119   :  { %v685_v27 = vpop.f32.mrb[2].mxu1  ;;  %v652_v28 = vadd.f32 %v651_v26, %v650_v25 }
 0x11a   :  { %v686_v29 = vpop.f32.mrb[3].mxu1 }
 0x11b   :  { %v687_v30 = vadd.f32 %v686_v29, %v685_v27  ;;  %v371_v31 = vadd.f32 %v652_v28, %v301_v24 }
 0x11d   :  { %v441_v32 = vadd.f32 %v687_v30, %v371_v31 }
 0x11f   :  { %v444_v33 = vmax.f32 %v441_v32, 0.0 }
 0x121   :  { %702 = vmatmul.mubr.msk.f32.vlgmr.msra.gmra.mrb[4].mxu0 %vm456_vm1, %v444_v33 }
 0x1f4   :  { %v526_v35 = vpop.f32.mrb[4].mxu0 }
 0x1f5   :  { %v527_v36 = vadd.f32 %v546_v34, %v526_v35  ;;  %v703_v37 = vpop.f32.mrb[5].mxu0 }
 0x1f7   :  { %530 = vst [vmem:[#allocation2] sm:$0xff] %v527_v36 }
 0x1f8   :  { %853 = shalt.err (!%p850_p4)
}
 0x1f9   :  { %s854_s28 = scalar_lea.hbm %s1343_s5, 128 }
 0x1fa   :  { %p855_p5 = scmp.ne.s32.totalorder %s1343_s5, %s854_s28  ;;  %p858_p6 = scmp.lt.u32.totalorder %s854_s28, %s1343_s5 }
 0x1fc   :  { %p860_p7 = pnand %p858_p6, %p855_p5 }
 0x1fe   :  { %863 = shalt.err (!%p860_p7)
}
 0x1ff   :  { %540 = dma.vmem_to_hbm [thread:$0]  %s538_s24, 128, %s1343_s5, [#allocation3]  }
 0x200   :  { %864 = dma.done.wait [#allocation3], 128  }
 0x201   :  { %865 = vsyncadd [#allocation3], 4294967168 }
 0x202   :  { %544 = vsyncpa [#allocation3], 1 }

</bundles_post_ra>
